<compile_context>
chip_gen: v5e
topology: v5e:2x2
jax: 0.10.0
libtpu: 0.0.40
codegen_flags: <defaults>
</compile_context>

<pallas_src>
import jax
import jax.numpy as jnp
from jax import lax
from jax.experimental import pallas as pl
from jax.experimental.pallas import tpu as pltpu


# --------------------------------------------------------------------------
# Fused encoder-CLS + masked-group-mean kernel
# --------------------------------------------------------------------------

def _fused_cls_groupmean_kernel(valid_ref, mp_ref, w_patch_ref, w_pool_ref,
                                w1_ref, w2_ref, vec_ref, b1_ref, o_ref):
    # Shapes per grid step (bt batches = bt*G images):
    #   mp_ref    : (bt*G, cpp) bf16  per-image mean of the im2col patch rows
    #   valid_ref : (bt, 1)    int32  number of valid groups per batch
    #   vec_ref   : (5, D)     f32    [b_patch+pos_pool, cls_tok+pos0, ln_g, ln_b, b2]
    #   o_ref     : (bt, D)    f32    masked group-mean of the CLS features
    btg = mp_ref.shape[0]
    bt = o_ref.shape[0]
    g = btg // bt

    vec = vec_ref[...]
    b_pooled = vec[0:1, :]
    cls_pos = vec[1:2, :]
    ln_g = vec[2:3, :]
    ln_b = vec[3:4, :]
    b2 = vec[4:5, :]

    # Patch embedding with pooling folded ahead of the contraction:
    # mean_p(patches) @ W == mean_p(patches @ W)  ->  npatch x fewer MXU FLOPs
    # and no (rows*npatch, D) f32 intermediate.
    pooled = jnp.dot(mp_ref[...], w_patch_ref[...],
                     preferred_element_type=jnp.float32) + b_pooled
    mix = jnp.dot(pooled.astype(jnp.bfloat16), w_pool_ref[...],
                  preferred_element_type=jnp.float32)
    cls_pre = cls_pos + mix                                    # (bt*G, D) f32

    # Pre-LN residual MLP on the CLS rows (the only rows the plugin consumes).
    mu = jnp.mean(cls_pre, axis=-1, keepdims=True)
    var = jnp.mean((cls_pre - mu) ** 2, axis=-1, keepdims=True)
    xn = (cls_pre - mu) * lax.rsqrt(var + 1e-5) * ln_g + ln_b
    # TODO(synk): torch.nn.GELU default is exact (erf); tanh approximation kept
    # to stay on ops with guaranteed Mosaic lowering.
    h = jax.nn.gelu(jnp.dot(xn.astype(jnp.bfloat16), w1_ref[...],
                            preferred_element_type=jnp.float32) + b1_ref[...],
                    approximate=True)
    cls_out = cls_pre + jnp.dot(h.astype(jnp.bfloat16), w2_ref[...],
                                preferred_element_type=jnp.float32) + b2

    # Fused masked mean over the first valid_groups[b] groups of each batch.
    # sel[b, r] = 1 iff row r belongs to batch b and its group index is valid.
    valid = valid_ref[...]                                     # (bt, 1) int32
    col = lax.broadcasted_iota(jnp.int32, (bt, btg), 1)
    row = lax.broadcasted_iota(jnp.int32, (bt, btg), 0)
    local = col - row * g                                      # group id w.r.t. batch `row`
    sel = jnp.where((local >= 0) & (local < valid), 1.0, 0.0)  # (bt, bt*G) f32
    # Tiny (bt x bt*G x D) contraction; kept f32 so the group sum is exact.
    ssum = jnp.dot(sel, cls_out, preferred_element_type=jnp.float32)
    # Exact division (per review). valid == 0 gives NaN like torch's empty mean.
    o_ref[...] = ssum / valid.astype(jnp.float32)


# --------------------------------------------------------------------------
# Wrapper
# --------------------------------------------------------------------------

def _pick_batches_per_block(B, G):
    # Target ~512 image rows per grid step (measured ~85% of HBM roofline at
    # 512-row tiles vs ~29% at 128; each step also costs ~0.35 us), keep the
    # output-row count a multiple of 8 when possible, and keep >=2 grid steps
    # at large B so v7x megacore ("parallel") can split the batch axis.
    bt = max(1, 512 // max(G, 1))
    bt = min(bt, B)
    if bt >= 8:
        bt -= bt % 8
    if bt >= B and B >= 16:
        bt = max(8, B // 2)
    while B % bt:                      # full blocks only (no ragged tail)
        bt -= 1
    return bt


def visual_plugin_forward(inputs, valid_groups, adj_matrix, params, patch_size,
                          batches_per_block=None):
    """inputs: (B, G, C, H, W) f32 -> (B, D) f32 (eval-mode VisualPlugin)."""
    # gcn_layer_number = 0 -> self.gcn is None, adj_matrix unused.
    # TODO(synk): GCNModule path (gcn_layer_number > 0) not implemented.
    del adj_matrix
    B, G, C, H, W = inputs.shape
    P = patch_size
    N = B * G
    nph, npw = H // P, W // P
    cpp = C * P * P
    D = params["w_patch"].shape[1]
    F = params["w1"].shape[1]

    # Per-image mean of the im2col patch rows, computed as a plain XLA
    # reduction on the pixel tensor (no materialized im2col / transpose):
    # mean over the (nph, npw) patch grid keeps the (c, dy, dx) row order of
    # w_patch.  Kernel HBM input is (N, cpp) bf16, npatch x smaller.
    mp = inputs.reshape(N, C, nph, P, npw, P).mean(axis=(2, 4))
    mp = mp.reshape(N, cpp).astype(jnp.bfloat16)

    # Fold parameter-only terms and pack the small D-wide vectors into one
    # (5, D) input (fewer DMA descriptors / padded tiles).
    pos_pool = jnp.mean(params["pos_emb"][1:], axis=0)
    vecs = jnp.stack([
        params["b_patch"] + pos_pool,                 # added to pooled tokens
        params["cls_token"] + params["pos_emb"][0],   # CLS + its position
        params["ln_g"], params["ln_b"], params["b2"],
    ], axis=0).astype(jnp.float32)                    # (5, D)

    bt = batches_per_block or _pick_batches_per_block(B, G)
    bt = min(bt, B)
    while B % bt:
        bt -= 1

    valid2d = valid_groups.astype(jnp.int32).reshape(B, 1)

    const = lambda i: (0, 0)
    resident = dict(pipeline_mode=pl.Buffered(1))     # fetched once, no double buffer

    out = pl.pallas_call(
        _fused_cls_groupmean_kernel,
        out_shape=jax.ShapeDtypeStruct((B, D), jnp.float32),
        grid=(B // bt,),
        in_specs=[
            pl.BlockSpec((bt, 1), lambda i: (i, 0)),          # valid counts
            pl.BlockSpec((bt * G, cpp), lambda i: (i, 0)),    # mean patches
            pl.BlockSpec((cpp, D), const, **resident),        # w_patch
            pl.BlockSpec((D, D), const, **resident),          # w_pool
            pl.BlockSpec((D, F), const, **resident),          # w1
            pl.BlockSpec((F, D), const, **resident),          # w2
            pl.BlockSpec((5, D), const, **resident),          # packed vectors
            pl.BlockSpec((1, F), const, **resident),          # b1
        ],
        out_specs=pl.BlockSpec((bt, D), lambda i: (i, 0)),
        compiler_params=pltpu.CompilerParams(
            dimension_semantics=("parallel",),
            # 48 MiB: under v7x's 64 MiB physical VMEM with headroom, well
            # above the 16/32 MiB default scoped limits on v5e/v6e so large
            # resident weights + a >=512-row double-buffered tile still fit.
            vmem_limit_bytes=48 * 1024 * 1024),
    )(valid2d, mp, params["w_patch"], params["w_pool"],
      params["w1"], params["w2"], vecs, params["b1"].reshape(1, F))

    # nn.Dropout(p=0.33) is identity in eval mode.
    # TODO(synk): training-mode dropout RNG not implemented (eval semantics).
    return out


# --------------------------------------------------------------------------
# Pure-JAX reference (token-level formulation of the same synthetic encoder)
# --------------------------------------------------------------------------

def reference_forward(inputs, valid_groups, params, patch_size):
    B, G, C, H, W = inputs.shape
    P = patch_size
    N = B * G
    nph, npw = H // P, W // P
    npatch = nph * npw
    cpp = C * P * P
    D = params["w_patch"].shape[1]

    x = inputs.reshape(N, C, H, W)
    patches = x.reshape(N, C, nph, P, npw, P).transpose(0, 2, 4, 1, 3, 5)
    patches = patches.reshape(N * npatch, cpp).astype(jnp.bfloat16)
    emb = jnp.dot(patches, params["w_patch"],
                  preferred_element_type=jnp.float32).reshape(N, npatch, D)
    emb = emb + params["b_patch"]
    cls = jnp.broadcast_to(params["cls_token"].reshape(1, 1, D), (N, 1, D))
    tokens = jnp.concatenate([cls, emb], axis=1) + params["pos_emb"][None]
    pooled = tokens[:, 1:, :].mean(axis=1)                       # (N, D)
    cls_pre = tokens[:, 0, :] + jnp.dot(pooled.astype(jnp.bfloat16),
                                        params["w_pool"],
                                        preferred_element_type=jnp.float32)
    mu = cls_pre.mean(-1, keepdims=True)
    var = ((cls_pre - mu) ** 2).mean(-1, keepdims=True)
    xn = (cls_pre - mu) * jax.lax.rsqrt(var + 1e-5) * params["ln_g"] \
        + params["ln_b"]
    h = jax.nn.gelu(jnp.dot(xn.astype(jnp.bfloat16), params["w1"],
                            preferred_element_type=jnp.float32) + params["b1"],
                    approximate=True)
    cls_out = cls_pre + jnp.dot(h.astype(jnp.bfloat16), params["w2"],
                                preferred_element_type=jnp.float32) \
        + params["b2"]
    cls_out = cls_out.reshape(B, G, D)
    outs = []
    for i in range(B):
        c = int(valid_groups[i])
        outs.append(cls_out[i, :c, :].mean(axis=0))
    return jnp.stack(outs)


# --------------------------------------------------------------------------
# Driver
# --------------------------------------------------------------------------

if __name__ == "__main__":
    B, G, C, H, W = 4, 4, 4, 16, 16
    P = 8
    D, F = 128, 256
    npatch = (H // P) * (W // P)
    cpp = C * P * P

    key = jax.random.PRNGKey(0)
    ks = jax.random.split(key, 12)
    params = {
        "w_patch": (0.02 * jax.random.normal(ks[0], (cpp, D), jnp.float32)
                    ).astype(jnp.bfloat16),
        "b_patch": 0.01 * jax.random.normal(ks[1], (D,), jnp.float32),
        "cls_token": 0.02 * jax.random.normal(ks[2], (D,), jnp.float32),
        "pos_emb": 0.02 * jax.random.normal(ks[3], (1 + npatch, D),
                                            jnp.float32),
        "w_pool": (0.02 * jax.random.normal(ks[4], (D, D), jnp.float32)
                   ).astype(jnp.bfloat16),
        "ln_g": 1.0 + 0.1 * jax.random.normal(ks[5], (D,), jnp.float32),
        "ln_b": 0.1 * jax.random.normal(ks[6], (D,), jnp.float32),
        "w1": (0.02 * jax.random.normal(ks[7], (D, F), jnp.float32)
               ).astype(jnp.bfloat16),
        "b1": 0.01 * jax.random.normal(ks[8], (F,), jnp.float32),
        "w2": (0.02 * jax.random.normal(ks[9], (F, D), jnp.float32)
               ).astype(jnp.bfloat16),
        "b2": 0.01 * jax.random.normal(ks[10], (D,), jnp.float32),
    }

    inputs = jax.random.normal(ks[11], (B, G, C, H, W), jnp.float32)
    valid_groups = jnp.array([2, 4, 1, 3], dtype=jnp.int32)
    adj_matrix = jnp.broadcast_to(jnp.eye(G, dtype=jnp.float32), (B, G, G))

    out = visual_plugin_forward(inputs, valid_groups, adj_matrix, params, P)
    out = jax.block_until_ready(out)
    assert out.shape == (B, D), out.shape
    assert bool(jnp.all(jnp.isfinite(out)))

    ref = jax.block_until_ready(
        reference_forward(inputs, valid_groups, params, P))
    max_err = float(jnp.max(jnp.abs(out - ref)))
    assert jnp.allclose(out, ref, atol=5e-3, rtol=2e-2), max_err

    print("KERNEL_OK")
</pallas_src>

<mosaic_0001>
module attributes {stable_mosaic.version = 11 : i64} {
  func.func @_fused_cls_groupmean_kernel(%arg0: i32, %arg1: memref<4x1xi32, #tpu.memory_space<vmem>>, %arg2: memref<16x256xbf16, #tpu.memory_space<vmem>>, %arg3: memref<256x128xbf16, #tpu.memory_space<vmem>>, %arg4: memref<128x128xbf16, #tpu.memory_space<vmem>>, %arg5: memref<128x256xbf16, #tpu.memory_space<vmem>>, %arg6: memref<256x128xbf16, #tpu.memory_space<vmem>>, %arg7: memref<5x128xf32, #tpu.memory_space<vmem>>, %arg8: memref<1x256xf32, #tpu.memory_space<vmem>>, %arg9: memref<4x128xf32, #tpu.memory_space<vmem>>) attributes {dimension_semantics = [#tpu.dimension_semantics<parallel>], iteration_bounds = array<i64: 1>, scalar_prefetch = 0 : i64, scratch_operands = 0 : i64, tpu.core_type = #tpu.core_type<tc>, window_params = [{transform_indices = @transform_0, window_bounds = array<i64: 4, 1>}, {transform_indices = @transform_1, window_bounds = array<i64: 16, 256>}, {pipeline_mode = #tpu.pipeline_mode<synchronous>, transform_indices = @transform_2, window_bounds = array<i64: 256, 128>}, {pipeline_mode = #tpu.pipeline_mode<synchronous>, transform_indices = @transform_3, window_bounds = array<i64: 128, 128>}, {pipeline_mode = #tpu.pipeline_mode<synchronous>, transform_indices = @transform_4, window_bounds = array<i64: 128, 256>}, {pipeline_mode = #tpu.pipeline_mode<synchronous>, transform_indices = @transform_5, window_bounds = array<i64: 256, 128>}, {pipeline_mode = #tpu.pipeline_mode<synchronous>, transform_indices = @transform_6, window_bounds = array<i64: 5, 128>}, {pipeline_mode = #tpu.pipeline_mode<synchronous>, transform_indices = @transform_7, window_bounds = array<i64: 1, 256>}, {transform_indices = @transform_8, window_bounds = array<i64: 4, 128>}]} {
    %c0 = arith.constant 0 : index
    %c0_0 = arith.constant 0 : index
    %0 = vector.load %arg7[%c0, %c0_0] : memref<5x128xf32, #tpu.memory_space<vmem>>, vector<5x128xf32>
    %1 = vector.extract_strided_slice %0 {offsets = [0, 0], sizes = [1, 128], strides = [1, 1]} : vector<5x128xf32> to vector<1x128xf32>
    %2 = vector.extract_strided_slice %0 {offsets = [1, 0], sizes = [1, 128], strides = [1, 1]} : vector<5x128xf32> to vector<1x128xf32>
    %3 = vector.extract_strided_slice %0 {offsets = [2, 0], sizes = [1, 128], strides = [1, 1]} : vector<5x128xf32> to vector<1x128xf32>
    %4 = vector.extract_strided_slice %0 {offsets = [3, 0], sizes = [1, 128], strides = [1, 1]} : vector<5x128xf32> to vector<1x128xf32>
    %5 = vector.extract_strided_slice %0 {offsets = [4, 0], sizes = [1, 128], strides = [1, 1]} : vector<5x128xf32> to vector<1x128xf32>
    %c0_1 = arith.constant 0 : index
    %c0_2 = arith.constant 0 : index
    %6 = vector.load %arg2[%c0_1, %c0_2] : memref<16x256xbf16, #tpu.memory_space<vmem>>, vector<16x256xbf16>
    %c0_3 = arith.constant 0 : index
    %c0_4 = arith.constant 0 : index
    %7 = vector.load %arg3[%c0_3, %c0_4] : memref<256x128xbf16, #tpu.memory_space<vmem>>, vector<256x128xbf16>
    %cst = arith.constant dense<0.000000e+00> : vector<16x128xf32>
    %8 = tpu.matmul %6, %7, %cst {dimension_numbers = #tpu.dot_dimension_numbers<[1], [0], [0], [1], [0, 0, 1, 1], [], []>} : vector<16x256xbf16>, vector<256x128xbf16>, vector<16x128xf32> -> vector<16x128xf32>
    %9 = vector.broadcast %1 : vector<1x128xf32> to vector<16x128xf32>
    %10 = arith.addf %8, %9 : vector<16x128xf32>
    %11 = arith.truncf %10 : vector<16x128xf32> to vector<16x128xbf16>
    %c0_5 = arith.constant 0 : index
    %c0_6 = arith.constant 0 : index
    %12 = vector.load %arg4[%c0_5, %c0_6] : memref<128x128xbf16, #tpu.memory_space<vmem>>, vector<128x128xbf16>
    %cst_7 = arith.constant dense<0.000000e+00> : vector<16x128xf32>
    %13 = tpu.matmul %11, %12, %cst_7 {dimension_numbers = #tpu.dot_dimension_numbers<[1], [0], [0], [1], [0, 0, 1, 1], [], []>} : vector<16x128xbf16>, vector<128x128xbf16>, vector<16x128xf32> -> vector<16x128xf32>
    %14 = vector.broadcast %2 : vector<1x128xf32> to vector<16x128xf32>
    %15 = arith.addf %14, %13 : vector<16x128xf32>
    %cst_8 = arith.constant dense<0.000000e+00> : vector<16xf32>
    %16 = vector.multi_reduction <add>, %15, %cst_8 [1] : vector<16x128xf32> to vector<16xf32>
    %17 = vector.shape_cast %16 : vector<16xf32> to vector<16x1xf32>
    %cst_9 = arith.constant 1.280000e+02 : f32
    %18 = vector.broadcast %cst_9 : f32 to vector<16x1xf32>
    %19 = arith.divf %17, %18 : vector<16x1xf32>
    %20 = vector.broadcast %19 : vector<16x1xf32> to vector<16x128xf32>
    %21 = arith.subf %15, %20 : vector<16x128xf32>
    %22 = arith.mulf %21, %21 : vector<16x128xf32>
    %cst_10 = arith.constant dense<0.000000e+00> : vector<16xf32>
    %23 = vector.multi_reduction <add>, %22, %cst_10 [1] : vector<16x128xf32> to vector<16xf32>
    %24 = vector.shape_cast %23 : vector<16xf32> to vector<16x1xf32>
    %cst_11 = arith.constant 1.280000e+02 : f32
    %25 = vector.broadcast %cst_11 : f32 to vector<16x1xf32>
    %26 = arith.divf %24, %25 : vector<16x1xf32>
    %27 = vector.broadcast %19 : vector<16x1xf32> to vector<16x128xf32>
    %28 = arith.subf %15, %27 : vector<16x128xf32>
    %cst_12 = arith.constant 9.99999974E-6 : f32
    %29 = vector.broadcast %cst_12 : f32 to vector<16x1xf32>
    %30 = arith.addf %26, %29 : vector<16x1xf32>
    %31 = math.rsqrt %30 : vector<16x1xf32>
    %32 = vector.broadcast %31 : vector<16x1xf32> to vector<16x128xf32>
    %33 = arith.mulf %28, %32 : vector<16x128xf32>
    %34 = vector.broadcast %3 : vector<1x128xf32> to vector<16x128xf32>
    %35 = arith.mulf %33, %34 : vector<16x128xf32>
    %36 = vector.broadcast %4 : vector<1x128xf32> to vector<16x128xf32>
    %37 = arith.addf %35, %36 : vector<16x128xf32>
    %38 = arith.truncf %37 : vector<16x128xf32> to vector<16x128xbf16>
    %c0_13 = arith.constant 0 : index
    %c0_14 = arith.constant 0 : index
    %39 = vector.load %arg5[%c0_13, %c0_14] : memref<128x256xbf16, #tpu.memory_space<vmem>>, vector<128x256xbf16>
    %cst_15 = arith.constant dense<0.000000e+00> : vector<16x256xf32>
    %40 = tpu.matmul %38, %39, %cst_15 {dimension_numbers = #tpu.dot_dimension_numbers<[1], [0], [0], [1], [0, 0, 1, 1], [], []>} : vector<16x128xbf16>, vector<128x256xbf16>, vector<16x256xf32> -> vector<16x256xf32>
    %c0_16 = arith.constant 0 : index
    %c0_17 = arith.constant 0 : index
    %41 = vector.load %arg8[%c0_16, %c0_17] : memref<1x256xf32, #tpu.memory_space<vmem>>, vector<1x256xf32>
    %42 = vector.broadcast %41 : vector<1x256xf32> to vector<16x256xf32>
    %43 = arith.addf %40, %42 : vector<16x256xf32>
    %44 = arith.mulf %43, %43 : vector<16x256xf32>
    %45 = arith.mulf %43, %44 : vector<16x256xf32>
    %cst_18 = arith.constant 4.471500e-02 : f32
    %46 = vector.broadcast %cst_18 : f32 to vector<16x256xf32>
    %47 = arith.mulf %46, %45 : vector<16x256xf32>
    %48 = arith.addf %43, %47 : vector<16x256xf32>
    %cst_19 = arith.constant 0.797884583 : f32
    %49 = vector.broadcast %cst_19 : f32 to vector<16x256xf32>
    %50 = arith.mulf %49, %48 : vector<16x256xf32>
    %51 = math.tanh %50 : vector<16x256xf32>
    %cst_20 = arith.constant 1.000000e+00 : f32
    %52 = vector.broadcast %cst_20 : f32 to vector<16x256xf32>
    %53 = arith.addf %52, %51 : vector<16x256xf32>
    %cst_21 = arith.constant 5.000000e-01 : f32
    %54 = vector.broadcast %cst_21 : f32 to vector<16x256xf32>
    %55 = arith.mulf %54, %53 : vector<16x256xf32>
    %56 = arith.mulf %43, %55 : vector<16x256xf32>
    %57 = arith.truncf %56 : vector<16x256xf32> to vector<16x256xbf16>
    %c0_22 = arith.constant 0 : index
    %c0_23 = arith.constant 0 : index
    %58 = vector.load %arg6[%c0_22, %c0_23] : memref<256x128xbf16, #tpu.memory_space<vmem>>, vector<256x128xbf16>
    %cst_24 = arith.constant dense<0.000000e+00> : vector<16x128xf32>
    %59 = tpu.matmul %57, %58, %cst_24 {dimension_numbers = #tpu.dot_dimension_numbers<[1], [0], [0], [1], [0, 0, 1, 1], [], []>} : vector<16x256xbf16>, vector<256x128xbf16>, vector<16x128xf32> -> vector<16x128xf32>
    %60 = arith.addf %15, %59 : vector<16x128xf32>
    %61 = vector.broadcast %5 : vector<1x128xf32> to vector<16x128xf32>
    %62 = arith.addf %60, %61 : vector<16x128xf32>
    %c0_25 = arith.constant 0 : index
    %c0_26 = arith.constant 0 : index
    %63 = vector.load %arg1[%c0_25, %c0_26] : memref<4x1xi32, #tpu.memory_space<vmem>>, vector<4x1xi32>
    %64 = tpu.iota {dimensions = array<i32: 1>} : vector<4x16xi32>
    %65 = tpu.iota {dimensions = array<i32: 0>} : vector<4x16xi32>
    %c4_i32 = arith.constant 4 : i32
    %66 = vector.broadcast %c4_i32 : i32 to vector<4x16xi32>
    %67 = arith.muli %65, %66 : vector<4x16xi32>
    %68 = arith.subi %64, %67 : vector<4x16xi32>
    %c0_i32 = arith.constant 0 : i32
    %69 = vector.broadcast %c0_i32 : i32 to vector<4x16xi32>
    %70 = arith.cmpi sge, %68, %69 : vector<4x16xi32>
    %71 = vector.broadcast %63 : vector<4x1xi32> to vector<4x16xi32>
    %72 = arith.cmpi slt, %68, %71 : vector<4x16xi32>
    %73 = arith.andi %70, %72 : vector<4x16xi1>
    %cst_27 = arith.constant 1.000000e+00 : f32
    %cst_28 = arith.constant 0.000000e+00 : f32
    %74 = vector.broadcast %cst_27 : f32 to vector<4x16xf32>
    %75 = vector.broadcast %cst_28 : f32 to vector<4x16xf32>
    %76 = arith.select %73, %74, %75 : vector<4x16xi1>, vector<4x16xf32>
    %cst_29 = arith.constant dense<0.000000e+00> : vector<4x128xf32>
    %77 = tpu.matmul %76, %62, %cst_29 {dimension_numbers = #tpu.dot_dimension_numbers<[1], [0], [0], [1], [0, 0, 1, 1], [], []>} : vector<4x16xf32>, vector<16x128xf32>, vector<4x128xf32> -> vector<4x128xf32>
    %78 = arith.sitofp %63 : vector<4x1xi32> to vector<4x1xf32>
    %79 = vector.broadcast %78 : vector<4x1xf32> to vector<4x128xf32>
    %80 = arith.divf %77, %79 : vector<4x128xf32>
    %c0_30 = arith.constant 0 : index
    %c0_31 = arith.constant 0 : index
    %81 = vector.load %arg9[%c0_30, %c0_31] : memref<4x128xf32, #tpu.memory_space<vmem>>, vector<4x128xf32>
    tpu.vector_store %arg9[%c0_30, %c0_31], %80 {strides = array<i32>} : memref<4x128xf32, #tpu.memory_space<vmem>>, vector<4x128xf32>,
    return
  }
  func.func @transform_0(%arg0: i32) -> (i32, i32) {
    %c0_i32 = arith.constant 0 : i32
    %c0_i32_0 = arith.constant 0 : i32
    return %arg0, %c0_i32 : i32, i32
  }
  func.func @transform_1(%arg0: i32) -> (i32, i32) {
    %c0_i32 = arith.constant 0 : i32
    %c0_i32_0 = arith.constant 0 : i32
    return %arg0, %c0_i32 : i32, i32
  }
  func.func @transform_2(%arg0: i32) -> (i32, i32) {
    %c0_i32 = arith.constant 0 : i32
    %c0_i32_0 = arith.constant 0 : i32
    %c0_i32_1 = arith.constant 0 : i32
    return %c0_i32, %c0_i32_0 : i32, i32
  }
  func.func @transform_3(%arg0: i32) -> (i32, i32) {
    %c0_i32 = arith.constant 0 : i32
    %c0_i32_0 = arith.constant 0 : i32
    %c0_i32_1 = arith.constant 0 : i32
    return %c0_i32, %c0_i32_0 : i32, i32
  }
  func.func @transform_4(%arg0: i32) -> (i32, i32) {
    %c0_i32 = arith.constant 0 : i32
    %c0_i32_0 = arith.constant 0 : i32
    %c0_i32_1 = arith.constant 0 : i32
    return %c0_i32, %c0_i32_0 : i32, i32
  }
  func.func @transform_5(%arg0: i32) -> (i32, i32) {
    %c0_i32 = arith.constant 0 : i32
    %c0_i32_0 = arith.constant 0 : i32
    %c0_i32_1 = arith.constant 0 : i32
    return %c0_i32, %c0_i32_0 : i32, i32
  }
  func.func @transform_6(%arg0: i32) -> (i32, i32) {
    %c0_i32 = arith.constant 0 : i32
    %c0_i32_0 = arith.constant 0 : i32
    %c0_i32_1 = arith.constant 0 : i32
    return %c0_i32, %c0_i32_0 : i32, i32
  }
  func.func @transform_7(%arg0: i32) -> (i32, i32) {
    %c0_i32 = arith.constant 0 : i32
    %c0_i32_0 = arith.constant 0 : i32
    %c0_i32_1 = arith.constant 0 : i32
    return %c0_i32, %c0_i32_0 : i32, i32
  }
  func.func @transform_8(%arg0: i32) -> (i32, i32) {
    %c0_i32 = arith.constant 0 : i32
    %c0_i32_0 = arith.constant 0 : i32
    return %arg0, %c0_i32 : i32, i32
  }
}

</mosaic_0001>

<bundles_post_ra>
// kernel: tpu_custom_call.1
= control target key start
LH: loop header
LB: loop body
LE: loop exit
PB: predicated region body
PF: predicated region fallthrough
CT: control target
= control target key end

     0   :  { %13 = vsyncpa [#allocation3], 0  ;;  %s1423_s0 = inlined_call_operand.vmem [shape: s32[4,1], index: 0, kind: input, shape index: {}]   ;;  %s1424_s1 = inlined_call_operand.hbm [shape: bf16[16,256], index: 1, kind: input, shape index: {}]   ;;  %s1425_s2 = inlined_call_operand.hbm [shape: bf16[256,128], index: 2, kind: input, shape index: {}]   ;;  %s1426_s3 = inlined_call_operand.hbm [shape: bf16[128,128], index: 3, kind: input, shape index: {}]   ;;  %s1427_s4 = inlined_call_operand.hbm [shape: bf16[128,256], index: 4, kind: input, shape index: {}]   ;;  %s1428_s5 = inlined_call_operand.hbm [shape: bf16[256,128], index: 5, kind: input, shape index: {}]   ;;  %s1429_s6 = inlined_call_operand.vmem [shape: f32[5,128], index: 6, kind: input, shape index: {}]   ;;  %s1430_s7 = inlined_call_operand.vmem [shape: f32[1,256], index: 7, kind: input, shape index: {}]   ;;  %s1431_s8 = inlined_call_operand.hbm [shape: f32[4,128], index: 8, kind: output, shape index: {}]  }
   0x1   :  { %14 = vsyncpa [#allocation6], 0 }
   0x2   :  { %15 = vsyncpa [#allocation9], 0  ;;  %s36_s29 = sshll.u32 %s1425_s2, 4  ;;  %s37_s29 = int_to_ptr.hbm [resolvable:$true] %s36_s29 }
   0x3   :  { %16 = vsyncpa [#allocation4], 0  ;;  %s1296_s30 = smov [#allocation5]   ;;  %s1297_s10 = smov 64  }
   0x4   :  { %s38_s9 = sshll.u32 %s1296_s30, 4  ;;  %s1298_s11 = smov 4   ;;  %s39_s9 = int_to_ptr.vmem [resolvable:$true] %s38_s9 }
   0x5   :  { %44 = dma.hbm_to_vmem [thread:$0]  %s37_s29, 2048, %s39_s9, [#allocation6], %s1297_s10, %s1297_s10, %s1298_s11  }
   0x6   :  { %s62_s14 = sshll.u32 %s1427_s4, 4  ;;  %s1299_s15 = smov [#allocation8]   ;;  %s63_s14 = int_to_ptr.hbm [resolvable:$true] %s62_s14 }
   0x7   :  { %s64_s16 = sshll.u32 %s1299_s15, 4  ;;  %s23_s18 = sshll.u32 %s1424_s1, 4  ;;  %s65_s16 = int_to_ptr.vmem [resolvable:$true] %s64_s16  ;;  %s24_s18 = int_to_ptr.hbm [resolvable:$true] %s23_s18 }
   0x8   :  { %s1300_s19 = smov 128   ;;  %s1301_s20 = smov 8  }
   0x9   :  { %70 = dma.hbm_to_vmem [thread:$0]  %s63_s14, 2048, %s65_s16, [#allocation9], %s1300_s19, %s1300_s19, %s1301_s20  }
   0xa   :  { %s49_s23 = sshll.u32 %s1426_s3, 4  ;;  %s1302_s24 = smov [#allocation2]   ;;  %s50_s23 = int_to_ptr.hbm [resolvable:$true] %s49_s23 }
   0xb   :  { %s25_s25 = sshll.u32 %s1302_s24, 4  ;;  %s1303_s4 = smov [#allocation7]   ;;  %s26_s25 = int_to_ptr.vmem [resolvable:$true] %s25_s25 }
   0xc   :  { %31 = dma.hbm_to_vmem [thread:$0]  %s24_s18, 256, %s26_s25, [#allocation3], %s1300_s19, %s1300_s19, %s1301_s20  }
   0xd   :  { %s51_s26 = sshll.u32 %s1303_s4, 4  ;;  %s75_s1 = sshll.u32 %s1428_s5, 4  ;;  %s52_s26 = int_to_ptr.vmem [resolvable:$true] %s51_s26  ;;  %s76_s1 = int_to_ptr.hbm [resolvable:$true] %s75_s1 }
   0xe   :  { %57 = dma.hbm_to_vmem [thread:$0]  %s50_s23, 1024, %s52_s26, [#allocation6], %s1297_s10, %s1297_s10, %s1298_s11  }
   0xf   :  { %s1304_s29 = smov [#allocation10]  }
  0x10   :  { %s77_s30 = sshll.u32 %s1304_s29, 4  ;;  %s78_s30 = int_to_ptr.vmem [resolvable:$true] %s77_s30 }
  0x11   :  { %83 = dma.hbm_to_vmem [thread:$0]  %s76_s1, 2048, %s78_s30, [#allocation9], %s1297_s10, %s1297_s10, %s1298_s11  }
  0x12   :  { %1288 = dma.done.wait [#allocation3], 256  }
  0x13   :  { %1289 = vsyncadd [#allocation3], 4294967040 }
  0x14   :  { %1290 = dma.done.wait [#allocation6], 3072  }
  0x15   :  { %1291 = vsyncadd [#allocation6], 4294964224 }
  0x16   :  { %1292 = dma.done.wait [#allocation9], 4096  }
  0x17   :  { %1293 = vsyncadd [#allocation9], 4294963200  ;;  %v1064_v0 = vld [vmem:[#allocation5 + $0x38] sm:$0xff]  ;;  %v1063_v2 = vld [vmem:[#allocation5 + $0x30] sm:$0xff]  ;;  %v1305_v46 = vmov 128.0   ;;  %vm757_vm10 = vcmask 130048  }
  0x18   :  { %v1072_v1 = vld [vmem:[#allocation5 + $0x78] sm:$0xff]  ;;  %250 = vmatpush.bf16.msra.mxu0 %v1064_v0  ;;  %v1071_v3 = vld [vmem:[#allocation5 + $0x70] sm:$0xff]  ;;  %v1062_v4 = vld [vmem:[#allocation5 + $0x28] sm:$0xff]  ;;  %1128 = vrcp.f32 %v1305_v46  ;;  %s810_s14 = sshll.u32 %s1431_s8, 4  ;;  %s811_s14 = int_to_ptr.hbm [resolvable:$true] %s810_s14 }
  0x19   :  { %264 = vmatpush.bf16.msra.mxu1 %v1072_v1  ;;  %v1070_v5 = vld [vmem:[#allocation5 + $0x68] sm:$0xff]  ;;  %v1080_v6 = vld [vmem:[#allocation7 + $0x38] sm:$0xff]  ;;  %v1079_v7 = vld [vmem:[#allocation7 + $0x30] sm:$0xff] }
  0x1a   :  { %343 = vmatpush.bf16.msra.mxu2 %v1080_v6  ;;  %v1061_v8 = vld [vmem:[#allocation5 + $0x20] sm:$0xff]  ;;  %v1078_v10 = vld [vmem:[#allocation7 + $0x28] sm:$0xff]  ;;  %v1060_v11 = vld [vmem:[#allocation5 + $0x18] sm:$0xff] }
  0x1b   :  { %v1069_v9 = vld [vmem:[#allocation5 + $0x60] sm:$0xff]  ;;  %v1068_v12 = vld [vmem:[#allocation5 + $0x58] sm:$0xff]  ;;  %v1059_v14 = vld [vmem:[#allocation5 + $0x10] sm:$0xff] }
  0x1c   :  { %251 = vmatpush.bf16.msra.mxu0 %v1063_v2  ;;  %v1077_v13 = vld [vmem:[#allocation7 + $0x20] sm:$0xff]  ;;  %v1067_v15 = vld [vmem:[#allocation5 + $0x50] sm:$0xff]  ;;  %v1058_v16 = vld [vmem:[#allocation5 + $0x8] sm:$0xff] }
  0x1d   :  { %265 = vmatpush.bf16.msra.mxu1 %v1071_v3  ;;  %v1066_v17 = vld [vmem:[#allocation5 + $0x48] sm:$0xff]  ;;  %v1057_v18 = vld [vmem:[#allocation5] sm:$0xff]  ;;  %v824_v20 = vld [vmem:[#allocation2] sm:$0xf] }
  0x1e   :  { %344 = vmatpush.bf16.msra.mxu2 %v1079_v7  ;;  %v1065_v19 = vld [vmem:[#allocation5 + $0x40] sm:$0xff]  ;;  %v1056_v21 = vld [vmem:[#allocation2 + $0x4] sm:$0xf0]  ;;  %v1055_v22 = vld [vmem:[#allocation2 + $0x4] sm:$0xf]  ;;  %v1129_v47 = vpop.eup %1128 }
  0x1f   :  { %v826_v23 = vld [vmem:[#allocation2 + $0x8] sm:$0xf0]  ;;  %v825_v24 = vor.u32 %v1056_v21, %v824_v20  ;;  %v1075_v27 = vld [vmem:[#allocation7 + $0x10] sm:$0xff]  ;;  %v1074_v28 = vld [vmem:[#allocation7 + $0x8] sm:$0xff]  ;;  %v365_v48 = vmul.f32 128.0, %v1129_v47  ;;  %vm369_vm0 = vweird.f32 %v1129_v47 }
  0x20   :  { %252 = vmatpush.bf16.msra.mxu0 %v1062_v4  ;;  %v829_v25 = vor.u32 %v1055_v22, %v826_v23  ;;  %v1076_v26 = vld [vmem:[#allocation7 + $0x18] sm:$0xff]  ;;  %v1073_v29 = vld [vmem:[#allocation7] sm:$0xff]  ;;  %v1381_v30 = vld [vmem:[%s1429_s6] sm:$0x1f] }
  0x21   :  { %266 = vmatpush.bf16.msra.mxu1 %v1070_v5  ;;  %v143_v33 = vperm.slane %v1381_v30, 0  ;;  %v357_v41 = vperm.slane %v1381_v30, 1  ;;  %v366_v49 = vsub.f32 1.0, %v365_v48  ;;  %v984_v61 = vld [vmem:[#allocation8 + $0x70] sm:$0xf] }
  0x22   :  { %345 = vmatpush.bf16.msra.mxu2 %v1078_v10  ;;  %v1096_v62 = vld [vmem:[#allocation8 + $0x74] sm:$0xf0]  ;;  %v1095_v63 = vld [vmem:[#allocation8 + $0x74] sm:$0xf]  ;;  %v986_v1 = vld [vmem:[#allocation8 + $0x78] sm:$0xf0] }
  0x23   :  { %v367_v50 = vmul.f32 %v1129_v47, %v366_v49  ;;  %v985_v0 = vor.u32 %v1096_v62, %v984_v61  ;;  %v989_v2 = vor.u32 %v1095_v63, %v986_v1  ;;  %v976_v3 = vld [vmem:[#allocation8 + $0x60] sm:$0xf]  ;;  %v1094_v4 = vld [vmem:[#allocation8 + $0x64] sm:$0xf0]  ;;  %v1093_v5 = vld [vmem:[#allocation8 + $0x64] sm:$0xf] }
  0x24   :  { %253 = vmatpush.bf16.msra.mxu0 %v1061_v8  ;;  %v977_v6 = vor.u32 %v1094_v4, %v976_v3  ;;  %v978_v7 = vld [vmem:[#allocation8 + $0x68] sm:$0xf0]  ;;  %v1092_v10 = vld [vmem:[#allocation8 + $0x54] sm:$0xf0]  ;;  %v952_v21 = vld [vmem:[#allocation8 + $0x30] sm:$0xf] }
  0x25   :  { %267 = vmatpush.bf16.msra.mxu1 %v1069_v9  ;;  %v368_v51 = vadd.f32 %v1129_v47, %v367_v50  ;;  %516 = vmatpush.bf16.msra.mxu3 %v985_v0  ;;  %v981_v8 = vor.u32 %v1093_v5, %v978_v7  ;;  %v968_v9 = vld [vmem:[#allocation8 + $0x50] sm:$0xf]  ;;  %v1088_v22 = vld [vmem:[#allocation8 + $0x34] sm:$0xf0]  ;;  %v1087_v23 = vld [vmem:[#allocation8 + $0x34] sm:$0xf] }
  0x26   :  { %346 = vmatpush.bf16.msra.mxu2 %v1077_v13  ;;  %v970_v13 = vld [vmem:[#allocation8 + $0x58] sm:$0xf0]  ;;  %v407_v5 = vperm.slane %v1381_v30, 2 }
  0x27   :  { %v1391_v52 = vsel %vm369_vm0, %v1129_v47, %v368_v51 }
  0x28   :  { %254 = vmatpush.bf16.msra.mxu0 %v1060_v11  ;;  %v1091_v11 = vld [vmem:[#allocation8 + $0x54] sm:$0xf] }
  0x29   :  { %268 = vmatpush.bf16.msra.mxu1 %v1068_v12  ;;  %517 = vmatpush.bf16.msra.mxu3 %v977_v6  ;;  %v969_v12 = vor.u32 %v1092_v10, %v968_v9  ;;  %v410_v10 = vperm.slane %v1381_v30, 3 }
  0x2a   :  { %347 = vmatpush.bf16.msra.mxu2 %v1076_v26 }
  0x2c   :  { %255 = vmatpush.bf16.msra.mxu0 %v1059_v14  ;;  %v973_v14 = vor.u32 %v1091_v11, %v970_v13 }
  0x2d   :  { %269 = vmatpush.bf16.msra.mxu1 %v1067_v15  ;;  %518 = vmatpush.bf16.msra.mxu3 %v969_v12  ;;  %v960_v15 = vld [vmem:[#allocation8 + $0x40] sm:$0xf] }
  0x2e   :  { %348 = vmatpush.bf16.msra.mxu2 %v1075_v27  ;;  %v944_v27 = vld [vmem:[#allocation8 + $0x20] sm:$0xf] }
  0x30   :  { %256 = vmatpush.bf16.msra.mxu0 %v1058_v16  ;;  %v1090_v16 = vld [vmem:[#allocation8 + $0x44] sm:$0xf0] }
  0x31   :  { %270 = vmatpush.bf16.msra.mxu1 %v1066_v17  ;;  %v1089_v17 = vld [vmem:[#allocation8 + $0x44] sm:$0xf] }
  0x32   :  { %349 = vmatpush.bf16.msra.mxu2 %v1074_v28  ;;  %v1086_v28 = vld [vmem:[#allocation8 + $0x24] sm:$0xf0] }
  0x34   :  { %257 = vmatpush.bf16.msra.mxu0 %v1057_v18  ;;  %v961_v18 = vor.u32 %v1090_v16, %v960_v15  ;;  %v1112_v15 = vld [vmem:[#allocation10 + $0x78] sm:$0xff] }
  0x35   :  { %271 = vmatpush.bf16.msra.mxu1 %v1065_v19  ;;  %v962_v19 = vld [vmem:[#allocation8 + $0x48] sm:$0xf0]  ;;  %v1104_v16 = vld [vmem:[#allocation10 + $0x38] sm:$0xff] }
  0x36   :  { %350 = vmatpush.bf16.msra.mxu2 %v1073_v29  ;;  %v965_v20 = vor.u32 %v1089_v17, %v962_v19  ;;  %519 = vmatpush.bf16.msra.mxu3 %v961_v18  ;;  %v1085_v29 = vld [vmem:[#allocation8 + $0x24] sm:$0xf]  ;;  %v1110_v17 = vld [vmem:[#allocation10 + $0x68] sm:$0xff]  ;;  %v1103_v18 = vld [vmem:[#allocation10 + $0x30] sm:$0xff] }
  0x37   :  { %258 = vmatmul.bf16.vlgmr.msra.gmra.mxu0 %v825_v24  ;;  %v953_v24 = vor.u32 %v1088_v22, %v952_v21  ;;  %v1102_v19 = vld [vmem:[#allocation10 + $0x28] sm:$0xff]  ;;  %v1101_v21 = vld [vmem:[#allocation10 + $0x20] sm:$0xff]  ;;  %v1107_v22 = vld [vmem:[#allocation10 + $0x50] sm:$0xff] }
  0x38   :  { %272 = vmatmul.bf16.vlgmr.msra.gmra.mxu1 %v829_v25  ;;  %530 = vmatpush.bf16.msrb.mxu0 %v989_v2  ;;  %v954_v25 = vld [vmem:[#allocation8 + $0x38] sm:$0xf0] }
  0x39   :  { %v957_v26 = vor.u32 %v1087_v23, %v954_v25  ;;  %710 = vmatpush.bf16.msrb.mxu1 %v1104_v16  ;;  %v1100_v23 = vld [vmem:[#allocation10 + $0x18] sm:$0xff]  ;;  %v1106_v25 = vld [vmem:[#allocation10 + $0x48] sm:$0xff] }
  0x3a   :  { %520 = vmatpush.bf16.msra.mxu3 %v953_v24  ;;  %724 = vmatpush.bf16.msrb.mxu2 %v1112_v15  ;;  %v430_v24 = vld [vmem:[%s1430_s7] sm:$0x3] }
  0x3c   :  { %531 = vmatpush.bf16.msrb.mxu0 %v981_v8 }
  0x3d   :  { %711 = vmatpush.bf16.msrb.mxu1 %v1103_v18 }
  0x40   :  { %532 = vmatpush.bf16.msrb.mxu0 %v973_v14 }
  0x41   :  { %712 = vmatpush.bf16.msrb.mxu1 %v1102_v19 }
  0x44   :  { %533 = vmatpush.bf16.msrb.mxu0 %v965_v20  ;;  %v1108_v20 = vld [vmem:[#allocation10 + $0x58] sm:$0xff] }
  0x45   :  { %713 = vmatpush.bf16.msrb.mxu1 %v1101_v21 }
  0x48   :  { %534 = vmatpush.bf16.msrb.mxu0 %v957_v26  ;;  %v1099_v26 = vld [vmem:[#allocation10 + $0x10] sm:$0xff] }
  0x49   :  { %714 = vmatpush.bf16.msrb.mxu1 %v1100_v23 }
  0x4d   :  { %715 = vmatpush.bf16.msrb.mxu1 %v1099_v26 }
  0xb4   :  { %v259_v31 = vpop.f32.mrf.mxu0 }
  0xb5   :  { %v273_v32 = vpop.f32.mrf.mxu1  ;;  %v260_v34 = vadd.f32 %v259_v31, %v143_v33  ;;  %v945_v31 = vor.u32 %v1086_v28, %v944_v27  ;;  %v433_v27 = vperm.slane %v430_v24, 1  ;;  %v1105_v28 = vld [vmem:[#allocation10 + $0x40] sm:$0xff] }
  0xb7   :  { %v274_v38 = vadd.f32 %v273_v32, %v260_v34  ;;  %v946_v32 = vld [vmem:[#allocation8 + $0x28] sm:$0xf0]  ;;  %521 = vmatpush.bf16.msra.mxu3 %v945_v31  ;;  %v936_v34 = vld [vmem:[#allocation8 + $0x10] sm:$0xf] }
  0xbc   :  { %v261_v35 = vpop.f32.mrf.mxu0 }
  0xbd   :  { %v262_v36 = vadd.f32 %v261_v35, %v143_v33  ;;  %v275_v37 = vpop.f32.mrf.mxu1  ;;  %v949_v33 = vor.u32 %v1085_v29, %v946_v32  ;;  %v1084_v35 = vld [vmem:[#allocation8 + $0x14] sm:$0xf0]  ;;  %v1098_v29 = vld [vmem:[#allocation10 + $0x8] sm:$0xff] }
  0xbe   :  { %716 = vmatpush.bf16.msrb.mxu1 %v1098_v29 }
  0xbf   :  { %v276_v39 = vadd.f32 %v275_v37, %v262_v36  ;;  %v1083_v36 = vld [vmem:[#allocation8 + $0x14] sm:$0xf]  ;;  %535 = vmatpush.bf16.msrb.mxu0 %v949_v33  ;;  %v937_v37 = vor.u32 %v1084_v35, %v936_v34  ;;  %v432_v34 = vperm.slane %v430_v24, 0  ;;  %v1097_v35 = vld [vmem:[#allocation10] sm:$0xff] }
  0xc1   :  { %v278_v40 = vpack.c.bf16 %v276_v39, %v274_v38  ;;  %v938_v38 = vld [vmem:[#allocation8 + $0x18] sm:$0xf0]  ;;  %v928_v39 = vld [vmem:[#allocation8] sm:$0xf]  ;;  %522 = vmatpush.bf16.msra.mxu3 %v937_v37 }
  0xc2   :  { %717 = vmatpush.bf16.msrb.mxu1 %v1097_v35  ;;  %v740_v35 = vperm.slane %v1381_v30, 4 }
  0xc3   :  { %351 = vmatmul.bf16.vlgmr.msra.gmra.mxu2 %v278_v40  ;;  %v1082_v40 = vld [vmem:[#allocation8 + $0x4] sm:$0xf0] }
  0xc4   :  { %v929_v47 = vor.u32 %v1082_v40, %v928_v39 }
  0xc6   :  { %523 = vmatpush.bf16.msra.mxu3 %v929_v47 }
 0x146   :  { %v352_v42 = vpop.f32.mrf.mxu2 }
 0x147   :  { %v1385_v43 = vadd.f32 %v357_v41, %v352_v42  ;;  %v1081_v42 = vld [vmem:[#allocation8 + $0x4] sm:$0xf] }
 0x149   :  { %360 = vadd.xlane.f32.xlu0 %v1385_v43 }
 0x14e   :  { %v354_v44 = vpop.f32.mrf.mxu2 }
 0x14f   :  { %v1388_v45 = vadd.f32 %v357_v41, %v354_v44  ;;  %v941_v41 = vor.u32 %v1083_v36, %v938_v38  ;;  %v930_v44 = vld [vmem:[#allocation8 + $0x8] sm:$0xf0] }
 0x150   :  { %v933_v49 = vor.u32 %v1081_v42, %v930_v44 }
 0x151   :  { %362 = vadd.xlane.f32.xlu0 %v1388_v45  ;;  %536 = vmatpush.bf16.msrb.mxu0 %v941_v41 }
 0x155   :  { %537 = vmatpush.bf16.msrb.mxu0 %v933_v49 }
 0x1bc   :  { %v361_v53 = vpop.xlane.xlu0 %360 }
 0x1bd   :  { %v371_v54 = vmul.f32 %v1391_v52, %v361_v53 }
 0x1bf   :  { %v1395_v55 = vsub.f32 %v1385_v43, %v371_v54 }
 0x1c1   :  { %v375_v56 = vmul.f32 %v1395_v55, %v1395_v55 }
 0x1c3   :  { %377 = vadd.xlane.f32.xlu1 %v375_v56 }
 0x1c4   :  { %v363_v57 = vpop.xlane.xlu0 %362 }
 0x1c5   :  { %v372_v58 = vmul.f32 %v1391_v52, %v363_v57 }
 0x1c7   :  { %v1401_v59 = vsub.f32 %v1388_v45, %v372_v58 }
 0x1c9   :  { %v376_v60 = vmul.f32 %v1401_v59, %v1401_v59 }
 0x1cb   :  { %379 = vadd.xlane.f32.xlu1 %v376_v60 }
 0x236   :  { %v378_v46 = vpop.xlane.xlu1 %377 }
 0x237   :  { %v381_v48 = vmul.f32 %v378_v46, %v1391_v52  ;;  %v743_v46 = vld [vmem:[%s1423_s0] sm:$0xf]  ;;  %s1308_s0 = smov [#allocation11]  }
 0x238   :  { %s808_s11 = sshll.u32 %s1308_s0, 4  ;;  %s809_s11 = int_to_ptr.vmem [resolvable:$true] %s808_s11 }
 0x239   :  { %v383_v50 = vadd.f32 1e-05, %v381_v48 }
 0x23b   :  { %1130 = vrsqrt.f32 %v383_v50  ;;  %vm391_vm2 = vweird.f32 %v383_v50 }
 0x23e   :  { %v380_v51 = vpop.xlane.xlu1 %379 }
 0x23f   :  { %v382_v53 = vmul.f32 %v380_v51, %v1391_v52 }
 0x241   :  { %v1131_v54 = vpop.eup %1130  ;;  %v384_v56 = vadd.f32 1e-05, %v382_v53 }
 0x242   :  { %v386_v57 = vmul.f32 %v1131_v54, %v383_v50  ;;  %vm392_vm1 = vweird.f32 %v1131_v54  ;;  %v1306_v50 = vmov 0  }
 0x243   :  { %1132 = vrsqrt.f32 %v384_v56  ;;  %vm393_vm3 = vmor %vm391_vm2, %vm392_vm1  ;;  %vm401_vm5 = vweird.f32 %v384_v56  ;;  %1126 = vset.pattern.permute.xlu2 %v1306_v50  ;;  %1127 = vset.pattern.permute.xlu0 %v1306_v50 }
 0x244   :  { %v387_v58 = vmul.f32 %v1131_v54, %v386_v57  ;;  %752 = vperm.xlu2 %1126, %v743_v46  }
 0x246   :  { %v388_v60 = vmul.f32 0.5, %v387_v58 }
 0x248   :  { %v389_v61 = vsub.f32 1.5, %v388_v60  ;;  %v781_v60 = vcvt.s32.f32 %v743_v46 }
 0x249   :  { %v1133_v62 = vpop.eup %1132 }
 0x24a   :  { %v390_v63 = vmul.f32 %v1131_v54, %v389_v61  ;;  %v396_v0 = vmul.f32 %v1133_v62, %v384_v56  ;;  %vm402_vm4 = vweird.f32 %v1133_v62 }
 0x24b   :  { %vm403_vm6 = vmor %vm401_vm5, %vm402_vm4 }
 0x24c   :  { %v397_v1 = vmul.f32 %v1133_v62, %v396_v0  ;;  %v394_v3 = vsel %vm393_vm3, %v1131_v54, %v390_v63  ;;  %784 = vperm.xlu2 %1126, %v781_v60  }
 0x24d   :  { %v405_v52 = vmul.f32 %v394_v3, %v1395_v55  ;;  %v1111_v55 = vld [vmem:[#allocation10 + $0x70] sm:$0xff] }
 0x24e   :  { %v398_v2 = vmul.f32 0.5, %v397_v1  ;;  %725 = vmatpush.bf16.msrb.mxu2 %v1111_v55 }
 0x24f   :  { %v408_v9 = vmul.f32 %v407_v5, %v405_v52 }
 0x250   :  { %v399_v4 = vsub.f32 1.5, %v398_v2 }
 0x251   :  { %v411_v12 = vadd.f32 %v410_v10, %v408_v9 }
 0x252   :  { %v400_v6 = vmul.f32 %v1133_v62, %v399_v4  ;;  %726 = vmatpush.bf16.msrb.mxu2 %v1110_v17 }
 0x254   :  { %v404_v7 = vsel %vm403_vm6, %v1133_v62, %v400_v6 }
 0x255   :  { %v406_v8 = vmul.f32 %v404_v7, %v1401_v59  ;;  %v1109_v59 = vld [vmem:[#allocation10 + $0x60] sm:$0xff] }
 0x256   :  { %727 = vmatpush.bf16.msrb.mxu2 %v1109_v59 }
 0x257   :  { %v409_v11 = vmul.f32 %v407_v5, %v406_v8 }
 0x259   :  { %v412_v13 = vadd.f32 %v410_v10, %v409_v11 }
 0x25a   :  { %728 = vmatpush.bf16.msrb.mxu2 %v1108_v20  ;;  %v744_v20 = vlaneseq }
 0x25b   :  { %v413_v14 = vpack.c.bf16 %v412_v13, %v411_v12 }
 0x25c   :  { %v747_v21 = vshrl.u32 %v744_v20, 7  ;;  %v745_v24 = vand.u32 127, %v744_v20 }
 0x25d   :  { %524 = vmatmul.bf16.vlgmr.msra.gmra.mxu3 %v413_v14  ;;  %538 = vmatmul.bf16.vlgmr.msrb.gmra.mxu0 %v413_v14 }
 0x25e   :  { %729 = vmatpush.bf16.msrb.mxu2 %v1107_v22 }
 0x262   :  { %730 = vmatpush.bf16.msrb.mxu2 %v1106_v25  ;;  %v748_v25 = vmul.u32 4, %v747_v21 }
 0x264   :  { %v749_v26 = vsub.s32 %v745_v24, %v748_v25 }
 0x266   :  { %731 = vmatpush.bf16.msrb.mxu2 %v1105_v28  ;;  %vm750_vm7 = vcmp.ge.s32.totalorder %v749_v26, 0 }
 0x29e   :  { %v753_v28 = vpop.permute.xlu2 %752 }
 0x29f   :  { %vm754_vm8 = vcmp.lt.s32.totalorder %v749_v26, %v753_v28 }
 0x2a0   :  { %vm755_vm9 = vmand %vm750_vm7, %vm754_vm8 }
 0x2da   :  { %v539_v31 = vpop.f32.mrf.mxu0 }
 0x2db   :  { %v540_v32 = vadd.f32 %v539_v31, %v433_v27 }
 0x2dd   :  { %v545_v33 = vmul.f32 %v540_v32, %v540_v32 }
 0x2df   :  { %v549_v36 = vmul.f32 %v545_v33, %v540_v32 }
 0x2e0   :  { %v525_v37 = vpop.f32.mrf.mxu3 }
 0x2e1   :  { %v553_v38 = vmul.f32 0.044715, %v549_v36  ;;  %v526_v39 = vadd.f32 %v525_v37, %v432_v34  ;;  %v1307_v37 = vmov 0.0  }
 0x2e2   :  { %v541_v40 = vpop.f32.mrf.mxu0 }
 0x2e3   :  { %v557_v41 = vadd.f32 %v553_v38, %v540_v32  ;;  %v544_v42 = vmul.f32 %v526_v39, %v526_v39  ;;  %v542_v44 = vadd.f32 %v541_v40, %v433_v27  ;;  %v756_v38 = vsel %vm755_vm9, 1.0, %v1307_v37  ;;  %v785_v40 = vpop.permute.xlu2 %784 }
 0x2e4   :  { %vm792_vm11 = vweird.f32 %v785_v40  ;;  %v796_v30 = vand.u32 2147483647, %v785_v40 }
 0x2e5   :  { %v561_v47 = vmul.f32 0.7978846, %v557_v41  ;;  %v548_v48 = vmul.f32 %v544_v42, %v526_v39  ;;  %v547_v49 = vmul.f32 %v542_v44, %v542_v44 }
 0x2e6   :  { %vm797_vm14 = vcmp.eq.f32.partialorder %v796_v30, 8.507059e+37 }
 0x2e7   :  { %v552_v51 = vmul.f32 0.044715, %v548_v48  ;;  %v551_v53 = vmul.f32 %v547_v49, %v542_v44  ;;  %1134 = vtanh.f32 %v561_v47 }
 0x2e8   :  { %v527_v54 = vpop.f32.mrf.mxu3 }
 0x2e9   :  { %v556_v56 = vadd.f32 %v552_v51, %v526_v39  ;;  %v555_v57 = vmul.f32 0.044715, %v551_v53  ;;  %v528_v58 = vadd.f32 %v527_v54, %v432_v34 }
 0x2eb   :  { %v560_v61 = vmul.f32 0.7978846, %v556_v56  ;;  %v559_v62 = vadd.f32 %v555_v57, %v542_v44  ;;  %v546_v63 = vmul.f32 %v528_v58, %v528_v58 }
 0x2ed   :  { %v563_v0 = vmul.f32 0.7978846, %v559_v62  ;;  %v550_v1 = vmul.f32 %v546_v63, %v528_v58  ;;  %1136 = vtanh.f32 %v560_v61  ;;  %v1135_v2 = vpop.eup %1134 }
 0x2ee   :  { %v569_v52 = vadd.f32 1.0, %v1135_v2 }
 0x2ef   :  { %1138 = vtanh.f32 %v563_v0  ;;  %v554_v3 = vmul.f32 0.044715, %v550_v1 }
 0x2f0   :  { %v573_v9 = vmul.f32 0.5, %v569_v52 }
 0x2f1   :  { %v558_v4 = vadd.f32 %v554_v3, %v528_v58 }
 0x2f2   :  { %v577_v12 = vmul.f32 %v573_v9, %v540_v32 }
 0x2f3   :  { %v562_v5 = vmul.f32 0.7978846, %v558_v4  ;;  %v1137_v6 = vpop.eup %1136 }
 0x2f4   :  { %v568_v11 = vadd.f32 1.0, %v1137_v6 }
 0x2f5   :  { %v1139_v7 = vpop.eup %1138  ;;  %1140 = vtanh.f32 %v562_v5 }
 0x2f6   :  { %v571_v8 = vadd.f32 1.0, %v1139_v7  ;;  %v572_v16 = vmul.f32 0.5, %v568_v11  ;;  %1142 = vrcp.f32 %v785_v40 }
 0x2f8   :  { %v575_v10 = vmul.f32 0.5, %v571_v8  ;;  %v576_v18 = vmul.f32 %v572_v16, %v526_v39 }
 0x2fa   :  { %v579_v13 = vmul.f32 %v575_v10, %v542_v44 }
 0x2fb   :  { %v1141_v14 = vpop.eup %1140 }
 0x2fc   :  { %v581_v15 = vpack.c.bf16 %v579_v13, %v577_v12  ;;  %v570_v55 = vadd.f32 1.0, %v1141_v14  ;;  %v1143_v41 = vpop.eup %1142 }
 0x2fd   :  { %v788_v42 = vmul.f32 %v1143_v41, %v785_v40  ;;  %vm793_vm12 = vweird.f32 %v1143_v41 }
 0x2fe   :  { %732 = vmatmul.bf16.vlgmr.msrb.gmra.mxu2 %v581_v15  ;;  %v574_v17 = vmul.f32 0.5, %v570_v55  ;;  %vm794_vm13 = vmor %vm792_vm11, %vm793_vm12 }
 0x2ff   :  { %v789_v44 = vsub.f32 1.0, %v788_v42 }
 0x300   :  { %v578_v59 = vmul.f32 %v574_v17, %v528_v58 }
 0x301   :  { %v790_v46 = vmul.f32 %v1143_v41, %v789_v44 }
 0x302   :  { %v580_v19 = vpack.c.bf16 %v578_v59, %v576_v18 }
 0x304   :  { %718 = vmatmul.bf16.vlgmr.msrb.gmra.mxu1 %v580_v19 }
 0x381   :  { %v719_v22 = vpop.f32.mrf.mxu1  ;;  %v733_v23 = vpop.f32.mrf.mxu2 }
 0x382   :  { %v734_v27 = vadd.f32 %v733_v23, %v719_v22 }
 0x384   :  { %v738_v33 = vadd.f32 %v734_v27, %v1385_v43  ;;  %v798_v43 = vand.u32 2147483648, %v785_v40 }
 0x386   :  { %v741_v39 = vadd.f32 %v740_v35, %v738_v33  ;;  %v799_v47 = vor.u32 1.1754944e-38, %v798_v43 }
 0x389   :  { %v721_v29 = vpop.f32.mrf.mxu1  ;;  %v735_v31 = vpop.f32.mrf.mxu2 }
 0x38a   :  { %v736_v32 = vadd.f32 %v735_v31, %v721_v29 }
 0x38c   :  { %v739_v34 = vadd.f32 %v736_v32, %v1388_v45  ;;  %v791_v45 = vadd.f32 %v1143_v41, %v790_v46 }
 0x38e   :  { %v742_v36 = vadd.f32 %v740_v35, %v739_v34  ;;  %v795_v48 = vsel %vm794_vm13, %v1143_v41, %v791_v45 }
 0x38f   :  { %v800_v50 = vsel %vm797_vm14, %v799_v47, %v795_v48 }
 0x390   :  { %775 = vmatpush.msrb.mxu3 %v742_v36 }
 0x392   :  { %776 = vmatpush.msrb.mxu3 %v741_v39 }
 0x393   :  { %1054 = vmatmul.msk.f32.vlgmr.msrb.gmra.mxu3 %vm757_vm10, %v756_v38 }
 0x416   :  { %v778_v49 = vpop.f32.mrf.mxu3 }
 0x417   :  { %v801_v51 = vmul.f32 %v800_v50, %v778_v49 }
 0x419   :  { %802 = vst [vmem:[#allocation11] sm:$0xf] %v801_v51 }
 0x41a   :  { %813 = dma.vmem_to_hbm [thread:$0]  %s809_s11, 64, %s811_s14, [#allocation4]  }
 0x41b   :  { %1294 = dma.done.wait [#allocation4], 64  }
 0x41c   :  { %1295 = vsyncadd [#allocation4], 4294967232 }
 0x41d   :  { %818 = vsyncpa [#allocation3], 1 }
 0x41e   :  { %819 = vsyncpa [#allocation6], 1 }
 0x41f   :  { %820 = vsyncpa [#allocation9], 1 }
 0x420   :  { %821 = vsyncpa [#allocation4], 1 }

</bundles_post_ra>
